<compile_context>
chip_gen: v6e
topology: v6e:2x2x1
jax: 0.10.0
libtpu: 0.0.40
codegen_flags: <defaults>
</compile_context>

<pallas_src>
import functools
import math

import jax
import jax.numpy as jnp
from jax import lax
from jax.experimental import pallas as pl
from jax.experimental.pallas import tpu as pltpu


# ---------------------------------------------------------------------------
# Stateless per-element hash (dropout mask)
# ---------------------------------------------------------------------------
_GOLD = 0x9E3779B9
_MIX1 = 0x85EBCA6B
_MIX2 = 0xC2B2AE35


def _uniform_from_linear(linear_u32, seed_u32):
    """murmur3-style finalizer hash of a global element index -> f32 in [0, 1).

    Pure VPU integer ops (mul/xor/shift) so it lowers both under Mosaic and in
    interpret mode; keyed on global coordinates so the mask is tiling-independent.
    """
    h = linear_u32 * jnp.uint32(_GOLD) + seed_u32
    h = h ^ (h >> jnp.uint32(16))
    h = h * jnp.uint32(_MIX1)
    h = h ^ (h >> jnp.uint32(13))
    h = h * jnp.uint32(_MIX2)
    h = h ^ (h >> jnp.uint32(16))
    # Top 24 bits -> exact float32 in [0, 1).
    u24 = (h >> jnp.uint32(8)).astype(jnp.int32).astype(jnp.float32)
    return u24 * jnp.float32(1.0 / (1 << 24))


# ---------------------------------------------------------------------------
# Kernels
# ---------------------------------------------------------------------------
def _pe_add(x_ref, pe_ref, batch_repeat):
    """x + pe with the batch broadcast done in-VMEM (never materialized in HBM)."""
    pe = pe_ref[...]
    if batch_repeat is not None and batch_repeat > 1:
        # 2-D slab path: pe block (ts, D) -> (ts, B*D); layout matches x.reshape(S, B*D).
        pe = jnp.tile(pe, (1, batch_repeat))
    return x_ref[...] + pe            # 3-D path: (ts, 1, D|td) broadcasts over batch


def _add_pe_kernel(x_ref, pe_ref, o_ref, *, batch_repeat=None):
    """Eval mode: out = x + pe."""
    o_ref[...] = _pe_add(x_ref, pe_ref, batch_repeat).astype(o_ref.dtype)


def _add_pe_dropout_kernel(seed_ref, x_ref, pe_ref, o_ref, *,
                           p, dims, seq_tile, d_tile, batch_repeat=None):
    """Train mode: out = inverted_dropout(x + pe, p), fused in one HBM pass."""
    S, B, D = dims
    y = _pe_add(x_ref, pe_ref, batch_repeat)
    shp = y.shape

    # Global element coordinates (mask does not depend on the tiling).
    s = lax.broadcasted_iota(jnp.uint32, shp, 0)
    s = s + jnp.uint32(seq_tile) * pl.program_id(0).astype(jnp.uint32)
    if batch_repeat is None:
        # 3-D block (ts, B, td)
        b = lax.broadcasted_iota(jnp.uint32, shp, 1)
        d = lax.broadcasted_iota(jnp.uint32, shp, 2)
        if d_tile is not None:
            d = d + jnp.uint32(d_tile) * pl.program_id(1).astype(jnp.uint32)
        linear = (s * jnp.uint32(B) + b) * jnp.uint32(D) + d
    else:
        # 2-D slab block (ts, B*D); column c == b*D + d, so the linearization matches.
        c = lax.broadcasted_iota(jnp.uint32, shp, 1)
        linear = s * jnp.uint32(B * D) + c

    seed = seed_ref[0].astype(jnp.uint32)
    u = _uniform_from_linear(linear, seed)
    keep = u >= jnp.float32(p)                      # P(keep) = 1 - p

    # Scale in f32 (avoids a systematic bf16 rounding bias), cast once at the store.
    scaled = y.astype(jnp.float32) * jnp.float32(1.0 / (1.0 - p))
    o_ref[...] = jnp.where(keep, scaled, jnp.float32(0.0)).astype(o_ref.dtype)


# ---------------------------------------------------------------------------
# Tiling helpers
# ---------------------------------------------------------------------------
def _vmem_limit_bytes():
    try:
        cap = int(pltpu.get_tpu_info().vmem_capacity_bytes)
    except Exception:
        cap = 64 * 1024 * 1024           # conservative fallback (fits v7x's 64 MiB/TC)
    return min(cap // 2, 64 * 1024 * 1024)


def _block_target_bytes(vmem_limit):
    # Pipeline budget: 2 buffers x 3 arrays (x, out, pe; pe is small) -> /6, then clamp
    # to [1 MiB, 4 MiB].  This gives ~4 MiB x-blocks on v5e/v6e AND v7x (no shrinking on
    # v7x, where faster HBM makes the ~0.35 us/step overhead relatively larger).
    return max(1 << 20, min(4 << 20, vmem_limit // 6))


# ---------------------------------------------------------------------------
# Forward wrapper
# ---------------------------------------------------------------------------
def positional_encoding_forward(x, pe_full, *, p=0.1, training=False, seed=0,
                                seq_tile=None, donate_x=False):
    """x: (S, B, D); pe_full: (max_len, 1, D).  Returns dropout(x + pe[:S])."""
    S, B, D = x.shape
    dtype = x.dtype
    itemsize = jnp.dtype(dtype).itemsize
    sublane = {4: 8, 2: 16, 1: 32}.get(itemsize, 8)

    if training and p >= 1.0:            # degenerate case: everything dropped
        return jnp.zeros_like(x)

    pe = pe_full[:S]
    if pe.dtype != dtype:
        # TODO(synk): for repeated calls, store/cache the PE table in the model dtype at
        # init so this per-call cast (an extra S*D read+write) disappears entirely.
        pe = pe.astype(dtype)

    vmem_limit = _vmem_limit_bytes()
    target = _block_target_bytes(vmem_limit)
    row_bytes = B * D * itemsize
    lane_dense = (D % 128 == 0)

    if lane_dense:
        # Native 3-D layout.  Blocks with last-two dims == full (B, D) are legal for any
        # B; the seq tile needs no sublane alignment (can go down to 1 row).
        x_in, pe_in = x, pe
        batch_repeat = None
        d_tile = None
        if row_bytes > target and D > 128:
            # One row alone exceeds the budget: add a lane-dim grid axis (128-multiples).
            d_tile = max(128, ((target // max(B * itemsize, 1)) // 128) * 128)
            d_tile = min(d_tile, D)
            if D % d_tile != 0:
                d_tile = 128             # always divides a lane-dense D
        eff_row = B * (d_tile if d_tile is not None else D) * itemsize
        ts = max(1, min(S, target // max(eff_row, 1)))
        if seq_tile is not None:
            ts = max(1, min(int(seq_tile), S))
        # TODO(synk): if B alone is so large that B*128*itemsize > target, the batch dim
        # would also need tiling; not implemented (blocks may exceed the soft budget).

        if d_tile is None:
            grid = (pl.cdiv(S, ts),)
            x_block, pe_block = (ts, B, D), (ts, 1, D)
            idx = lambda i, *_: (i, 0, 0)
        else:
            grid = (pl.cdiv(S, ts), D // d_tile)
            x_block, pe_block = (ts, B, d_tile), (ts, 1, d_tile)
            idx = lambda i, j, *_: (i, 0, j)
        out_struct = jax.ShapeDtypeStruct((S, B, D), dtype)
    else:
        # Lane-dense 2-D slab: last dim B*D maps to lanes (bit-preserving reshape).
        # pe streams as (S, D) and is tiled across batch inside the kernel.
        x_in = x.reshape(S, B * D)
        pe_in = pe.reshape(S, D)
        batch_repeat = B
        d_tile = None
        ts = max(1, target // max(row_bytes + D * itemsize, 1))
        if ts >= S:
            ts = S
        else:
            ts = max(sublane, (ts // sublane) * sublane)   # 2-D second-last dim rule
        if seq_tile is not None:
            ts = min(int(seq_tile), S)
            if ts < S:
                ts = max(sublane, (ts // sublane) * sublane)
        # TODO(synk): pathological huge-row shapes with non-lane-dense D are not tiled
        # along the lane axis; blocks may exceed the soft VMEM budget.
        grid = (pl.cdiv(S, ts),)
        x_block, pe_block = (ts, B * D), (ts, D)
        idx = lambda i, *_: (i, 0)
        out_struct = jax.ShapeDtypeStruct((S, B * D), dtype)

    cost = pl.CostEstimate(
        flops=S * B * D * (8 if (training and p > 0.0) else 1),
        transcendentals=0,
        bytes_accessed=2 * S * B * D * itemsize + S * D * itemsize,
    )
    # TODO(synk): on v7x prefer dimension_semantics=(pltpu.CORE_PARALLEL, ...) so the seq
    # axis shards across both TensorCores' DMA engines; "parallel" kept here for safety.
    cparams = pltpu.CompilerParams(
        dimension_semantics=("parallel",) * len(grid),
        vmem_limit_bytes=vmem_limit,
    )

    if training and p > 0.0:
        seed_arr = jnp.asarray(seed, dtype=jnp.int32).reshape((1,))
        grid_spec = pltpu.PrefetchScalarGridSpec(
            num_scalar_prefetch=1,                       # seed lands in SMEM
            grid=grid,
            in_specs=[pl.BlockSpec(x_block, idx),
                      pl.BlockSpec(pe_block, idx)],
            out_specs=pl.BlockSpec(x_block, idx),
        )
        kernel = functools.partial(
            _add_pe_dropout_kernel, p=float(p), dims=(S, B, D),
            seq_tile=ts, d_tile=d_tile, batch_repeat=batch_repeat)
        out = pl.pallas_call(
            kernel,
            out_shape=out_struct,
            grid_spec=grid_spec,
            compiler_params=cparams,
            cost_estimate=cost,
            input_output_aliases=({1: 0} if donate_x else {}),
        )(seed_arr, x_in, pe_in)
    else:
        grid_spec = pltpu.PrefetchScalarGridSpec(
            num_scalar_prefetch=0,
            grid=grid,
            in_specs=[pl.BlockSpec(x_block, idx),
                      pl.BlockSpec(pe_block, idx)],
            out_specs=pl.BlockSpec(x_block, idx),
        )
        kernel = functools.partial(_add_pe_kernel, batch_repeat=batch_repeat)
        out = pl.pallas_call(
            kernel,
            out_shape=out_struct,
            grid_spec=grid_spec,
            compiler_params=cparams,
            cost_estimate=cost,
            input_output_aliases=({0: 0} if donate_x else {}),
        )(x_in, pe_in)

    return out.reshape(S, B, D)


# ---------------------------------------------------------------------------
# PE table construction (matches torch's sin/cos interleaving)
# ---------------------------------------------------------------------------
def make_pe_table(d_model, max_len=5000, dtype=jnp.float32):
    """Sinusoidal PE buffer: pe[:,0,0::2]=sin, pe[:,0,1::2]=cos."""
    assert d_model % 2 == 0, "d_model must be even"
    position = jnp.arange(max_len, dtype=jnp.float32)[:, None]               # (max_len, 1)
    div_term = jnp.exp(jnp.arange(0, d_model, 2, dtype=jnp.float32)
                       * -(math.log(10000.0) / d_model))                     # (d_model//2,)
    sin_part = jnp.sin(position * div_term)                                  # (max_len, d/2)
    cos_part = jnp.cos(position * div_term)                                  # (max_len, d/2)
    pe = jnp.stack([sin_part, cos_part], axis=-1).reshape(max_len, d_model)  # interleaved
    return pe[:, None, :].astype(dtype)                                      # (max_len, 1, d)


if __name__ == "__main__":
    seq_len, batch, d_model = 8, 2, 32
    p_drop = 0.1

    key = jax.random.PRNGKey(0)
    x = jax.random.normal(key, (seq_len, batch, d_model), dtype=jnp.float32)
    pe_full = make_pe_table(d_model, max_len=5000)
    ref = x + pe_full[:seq_len]

    # Eval-mode forward (dropout is identity), matching module.eval().
    out_eval = positional_encoding_forward(x, pe_full, p=p_drop, training=False)
    out_eval = jax.block_until_ready(out_eval)
    assert out_eval.shape == (seq_len, batch, d_model)
    assert jnp.allclose(out_eval, ref, atol=1e-6), "eval-mode mismatch vs reference"

    # Train-mode forward (fused inverted dropout): every element must be either
    # exactly 0 or (x + pe) / (1 - p), and a sane fraction must be dropped.
    out_tr = positional_encoding_forward(x, pe_full, p=p_drop, training=True, seed=0)
    out_tr = jax.block_until_ready(out_tr)
    assert out_tr.shape == (seq_len, batch, d_model)
    scaled = ref / (1.0 - p_drop)
    structural_ok = jnp.all((out_tr == 0.0) | (jnp.abs(out_tr - scaled) < 1e-4))
    assert bool(structural_ok), "train-mode dropout output not in {0, (x+pe)/(1-p)}"
    drop_frac = float(jnp.mean((out_tr == 0.0).astype(jnp.float32)))
    assert 0.0 < drop_frac < 0.5, f"dropout fraction {drop_frac} not plausible for p=0.1"

    print("KERNEL_OK")
</pallas_src>

<mosaic_0001>
module attributes {stable_mosaic.version = 11 : i64} {
  func.func @_add_pe_kernel(%arg0: i32, %arg1: memref<8x64xf32, #tpu.memory_space<vmem>>, %arg2: memref<8x32xf32, #tpu.memory_space<vmem>>, %arg3: memref<8x64xf32, #tpu.memory_space<vmem>>) attributes {dimension_semantics = [#tpu.dimension_semantics<parallel>], iteration_bounds = array<i64: 1>, scalar_prefetch = 0 : i64, scratch_operands = 0 : i64, tpu.core_type = #tpu.core_type<tc>, window_params = [{transform_indices = @transform_0, window_bounds = array<i64: 8, 64>}, {transform_indices = @transform_1, window_bounds = array<i64: 8, 32>}, {transform_indices = @transform_2, window_bounds = array<i64: 8, 64>}]} {
    %c0 = arith.constant 0 : index
    %c0_0 = arith.constant 0 : index
    %0 = vector.load %arg2[%c0, %c0_0] : memref<8x32xf32, #tpu.memory_space<vmem>>, vector<8x32xf32>
    %1 = tpu.concatenate %0, %0 in 1 : vector<8x32xf32>, vector<8x32xf32> -> vector<8x64xf32>
    %c0_1 = arith.constant 0 : index
    %c0_2 = arith.constant 0 : index
    %2 = vector.load %arg1[%c0_1, %c0_2] : memref<8x64xf32, #tpu.memory_space<vmem>>, vector<8x64xf32>
    %3 = arith.addf %2, %1 : vector<8x64xf32>
    %c0_3 = arith.constant 0 : index
    %c0_4 = arith.constant 0 : index
    %4 = vector.load %arg3[%c0_3, %c0_4] : memref<8x64xf32, #tpu.memory_space<vmem>>, vector<8x64xf32>
    tpu.vector_store %arg3[%c0_3, %c0_4], %3 {strides = array<i32>} : memref<8x64xf32, #tpu.memory_space<vmem>>, vector<8x64xf32>,
    return
  }
  func.func @transform_0(%arg0: i32) -> (i32, i32) {
    %c0_i32 = arith.constant 0 : i32
    %c0_i32_0 = arith.constant 0 : i32
    return %arg0, %c0_i32 : i32, i32
  }
  func.func @transform_1(%arg0: i32) -> (i32, i32) {
    %c0_i32 = arith.constant 0 : i32
    %c0_i32_0 = arith.constant 0 : i32
    return %arg0, %c0_i32 : i32, i32
  }
  func.func @transform_2(%arg0: i32) -> (i32, i32) {
    %c0_i32 = arith.constant 0 : i32
    %c0_i32_0 = arith.constant 0 : i32
    return %arg0, %c0_i32 : i32, i32
  }
}

</mosaic_0001>

<bundles_post_ra>
// kernel: tpu_custom_call.1
= control target key start
LH: loop header
LB: loop body
LE: loop exit
PB: predicated region body
PF: predicated region fallthrough
CT: control target
= control target key end

     0   :  { %7 = vsyncpa [#allocation3], 0  ;;  %s161_s0 = inlined_call_operand.hbm [shape: f32[8,64], index: 0, kind: input, shape index: {}]   ;;  %s162_s1 = inlined_call_operand.hbm [shape: f32[8,32], index: 1, kind: input, shape index: {}]   ;;  %s163_s2 = inlined_call_operand.hbm [shape: f32[8,64], index: 2, kind: output, shape index: {}]  }
   0x1   :  { %8 = vsyncpa [#allocation6], 0 }
   0x2   :  { %9 = vsyncpa [#allocation4], 0  ;;  %s133_s9 = smov [#allocation2]   ;;  %s134_s11 = smov [#allocation5]  }
   0x3   :  { %s16_s10 = sshll.u32 %s133_s9, 4  ;;  %s26_s12 = sshll.u32 %s134_s11, 4  ;;  %s17_s10 = int_to_ptr.vmem [resolvable:$true] %s16_s10  ;;  %s27_s12 = int_to_ptr.vmem [resolvable:$true] %s26_s12 }
   0x4   :  { %s75_s13 = scalar_lea.vmem %s17_s10, 128  ;;  %p80_p1 = scmp.lt.s32.totalorder %s17_s10, %s17_s10 }
   0x5   :  { %p76_p0 = scmp.ne.s32.totalorder %s17_s10, %s75_s13  ;;  %p81_p2 = scmp.lt.s32.totalorder %s75_s13, %s75_s13 }
   0x7   :  { %p82_p3 = por %p81_p2, %p80_p1 }
   0x9   :  { %p83_p4 = pnand %p82_p3, %p76_p0 }
   0xb   :  { %86 = shalt.err (!%p83_p4)
}
   0xc   :  { %19 = dma.hbm_to_vmem [thread:$0]  %s161_s0, 128, %s17_s10, [#allocation3]  }
   0xd   :  { %s95_s16 = scalar_lea.vmem %s27_s12, 128  ;;  %p100_p6 = scmp.lt.s32.totalorder %s27_s12, %s27_s12 }
   0xe   :  { %p96_p5 = scmp.ne.s32.totalorder %s27_s12, %s95_s16  ;;  %p101_p7 = scmp.lt.s32.totalorder %s95_s16, %s95_s16 }
  0x10   :  { %p102_p8 = por %p101_p7, %p100_p6 }
  0x12   :  { %p103_p9 = pnand %p102_p8, %p96_p5 }
  0x14   :  { %106 = shalt.err (!%p103_p9)
}
  0x15   :  { %29 = dma.hbm_to_vmem [thread:$0]  %s162_s1, 128, %s27_s12, [#allocation6]  }
  0x16   :  { %127 = dma.done.wait [#allocation3], 128  }
  0x17   :  { %128 = vsyncadd [#allocation3], 4294967168 }
  0x18   :  { %129 = dma.done.wait [#allocation6], 128  }
  0x19   :  { %130 = vsyncadd [#allocation6], 4294967168  ;;  %v36_v0 = vld [vmem:[#allocation5] sm:$0xff]  ;;  %s135_s19 = smov 32   ;;  %vm41_vm0 = vcmask 261120   ;;  %v43_v1 = vld [vmem:[#allocation2] sm:$0xff] }
  0x1a   :  { %38 = vrot.lane.b32.xlu0 %v36_v0, %s135_s19  ;;  %s136_s0 = smov [#allocation7]   ;;  %vm45_vm1 = vcmask 523264  }
  0x1b   :  { %s53_s20 = sshll.u32 %s136_s0, 4  ;;  %s54_s20 = int_to_ptr.vmem [resolvable:$true] %s53_s20 }
  0x1c   :  { %s107_s21 = scalar_lea.vmem %s54_s20, 128  ;;  %p112_p11 = scmp.lt.s32.totalorder %s54_s20, %s54_s20 }
  0x1d   :  { %p108_p10 = scmp.ne.s32.totalorder %s54_s20, %s107_s21  ;;  %p113_p12 = scmp.lt.s32.totalorder %s107_s21, %s107_s21 }
  0x1f   :  { %p114_p13 = por %p113_p12, %p112_p11 }
  0x21   :  { %p115_p0 = pnand %p114_p13, %p108_p10 }
  0x8c   :  { %v39_v2 = vpop.permute.xlu0 %38 }
  0x8d   :  { %v42_v3 = vsel %vm41_vm0, %v36_v0, %v39_v2 }
  0x8e   :  { %v44_v4 = vadd.f32 %v43_v1, %v42_v3 }
  0x90   :  { %46 = vst.msk [vmem:[#allocation7] sm:$0xff] %vm45_vm1, %v44_v4 }
  0x91   :  { %118 = shalt.err (!%p115_p0)
}
  0x92   :  { %56 = dma.vmem_to_hbm [thread:$0]  %s54_s20, 128, %s163_s2, [#allocation4]  }
  0x93   :  { %131 = dma.done.wait [#allocation4], 128  }
  0x94   :  { %132 = vsyncadd [#allocation4], 4294967168 }
  0x95   :  { %60 = vsyncpa [#allocation3], 1 }
  0x96   :  { %61 = vsyncpa [#allocation6], 1 }
  0x97   :  { %62 = vsyncpa [#allocation4], 1 }

</bundles_post_ra>
